<compile_context>
chip_gen: v7x
topology: tpu7x:2x2x1
jax: 0.10.0
libtpu: 0.0.40
codegen_flags: <defaults>
</compile_context>

<pallas_src>
import functools

import jax
import jax.numpy as jnp
from jax import lax
from jax.experimental import pallas as pl
from jax.experimental.pallas import tpu as pltpu


# ----------------------------------------------------------------------------
# Fused kernel: conv1(+BN+LeakyReLU) as one matmul, conv2 as H accumulated dots
# ----------------------------------------------------------------------------
def _patch_embed_kernel(x_ref, t_ref, b1_ref, w2_ref, b2_ref, o_ref, *, H, TB):
    # x_ref : (H*TB, W)           rows ordered (h, local_b)
    # t_ref : (W, NCOL1)          conv1 Toeplitz weights (BN folded)
    # b1_ref: (1, NCOL1)          conv1 bias (BN folded), per column
    # w2_ref: (H, NCOL1, NOUT)    conv2 weights, per input row kh
    # b2_ref: (1, NOUT)           conv2 bias, per output column
    # o_ref : (TB, NOUT)          output block, NOUT = W2out * E (lane-dense)

    # ---- conv1 + BN + LeakyReLU: one MXU dot (K = W <= 128, single pass).
    y = jnp.dot(x_ref[...], t_ref[...], preferred_element_type=jnp.float32)
    y = y + b1_ref[...]
    y = jnp.where(y > 0.0, y, 0.2 * y)            # LeakyReLU(0.2)

    # ---- conv2 (kernel (H,5), stride (1,5)): for each input row kh, a
    #      (TB, NCOL1) x (NCOL1, NOUT) dot accumulated into the output.
    #      Row slices are static and sublane-tile aligned (TB % 8 == 0).
    acc = jnp.zeros(o_ref.shape, jnp.float32)
    for kh in range(H):                            # static unroll (H = 16)
        acc = acc + jnp.dot(y[kh * TB:(kh + 1) * TB, :], w2_ref[kh],
                            preferred_element_type=jnp.float32)
    o_ref[...] = acc + b2_ref[...]


# ----------------------------------------------------------------------------
# PatchEmbedding forward (param/layout prep in plain JAX, compute in one kernel)
# ----------------------------------------------------------------------------
def patch_embedding_forward(x, params, *, tb=8):
    B, Cin, H, W = x.shape
    assert Cin == 1
    assert tb % 8 == 0
    eps = 1e-5
    f32 = jnp.float32

    w1, b1 = params["w1"], params["b1"]            # (C,1,1,KW1), (C,)
    w2, b2 = params["w2"], params["b2"]            # (E,C,KH2,KW2), (E,)
    C, KW1 = w1.shape[0], w1.shape[3]
    E, _, KH2, KW2 = w2.shape
    SW2 = 5

    W1out = W - KW1 + 1
    H2 = H - KH2 + 1
    W2out = (W1out - KW2) // SW2 + 1
    # This layout exploits: conv2 kernel spans full height, stride == kernel width.
    assert H2 == 1 and KW2 == SW2 and W1out == W2out * KW2
    NCOL1 = C * W1out                              # 50
    NOUT = W2out * E                               # 40

    # ---- fold BatchNorm (eval mode) into conv1 weight / bias
    scale = params["bn_gamma"] / jnp.sqrt(params["bn_var"] + eps)        # (C,)
    shift = params["bn_beta"] - params["bn_mean"] * scale
    w1f = (w1.reshape(C, KW1) * scale[:, None]).astype(f32)              # (C,KW1)
    b1f = (b1 * scale + shift).astype(f32)                               # (C,)

    # ---- Toeplitz matrix for conv1: T[w, c*W1out + j] = w1f[c, w-j]
    wi = jnp.arange(W)[:, None]                                          # (W,1)
    ji = jnp.arange(W1out)[None, :]                                      # (1,W1out)
    k = wi - ji
    valid = (k >= 0) & (k < KW1)
    kc = jnp.clip(k, 0, KW1 - 1)
    Tc = jnp.where(valid[None, :, :], w1f[:, kc], 0.0)                   # (C,W,W1out)
    T = Tc.transpose(1, 0, 2).reshape(W, NCOL1).astype(f32)              # (W,NCOL1)
    b1cols = jnp.repeat(b1f, W1out)[None, :]                             # (1,NCOL1)

    # ---- conv2 weights per input row kh, block-diagonal over output window:
    #      W2stack[kh, c*W1out + j, (j//KW2)*E + e] = w2[e, c, kh, j % KW2]
    w2f = w2.astype(f32)
    w2j = jnp.tile(w2f, (1, 1, 1, W2out))                                # (E,C,KH2,W1out)
    sel = (jnp.arange(W1out)[:, None] // KW2
           == jnp.arange(W2out)[None, :]).astype(f32)                    # (W1out,W2out)
    tmp = w2j[:, :, :, :, None] * sel[None, None, None, :, :]            # (E,C,KH2,W1out,W2out)
    W2stack = tmp.transpose(2, 1, 3, 4, 0).reshape(KH2, NCOL1, NOUT)     # (KH2,NCOL1,NOUT)
    b2cols = jnp.tile(b2.astype(f32), (W2out,))[None, :]                 # (1,NOUT)

    # ---- input layout: pad batch to a multiple of tb, reorder rows so that
    #      each grid step sees a contiguous (H*tb, W) slab with rows (h, local_b).
    nchunks = -(-B // tb)
    Bp = nchunks * tb
    x3 = x[:, 0, :, :].astype(f32)                                       # (B,H,W)
    if Bp != B:
        x3 = jnp.pad(x3, ((0, Bp - B), (0, 0), (0, 0)))
    xk = (x3.reshape(nchunks, tb, H, W)
            .transpose(0, 2, 1, 3)
            .reshape(nchunks * H * tb, W))                               # (nchunks*H*tb, W)

    kernel = functools.partial(_patch_embed_kernel, H=H, TB=tb)

    flops = 2 * Bp * H * (W * NCOL1 + NCOL1 * NOUT)
    bytes_accessed = 4 * (Bp * H * W + W * NCOL1 + NCOL1
                          + KH2 * NCOL1 * NOUT + NOUT + Bp * NOUT)

    out = pl.pallas_call(
        kernel,
        out_shape=jax.ShapeDtypeStruct((Bp, NOUT), f32),
        grid=(nchunks,),
        in_specs=[
            pl.BlockSpec((H * tb, W), lambda i: (i, 0)),                 # x slab
            pl.BlockSpec((W, NCOL1), lambda i: (0, 0)),                  # T (resident)
            pl.BlockSpec((1, NCOL1), lambda i: (0, 0)),                  # b1 (resident)
            pl.BlockSpec((KH2, NCOL1, NOUT), lambda i: (0, 0, 0)),       # W2 (resident)
            pl.BlockSpec((1, NOUT), lambda i: (0, 0)),                   # b2 (resident)
        ],
        out_specs=pl.BlockSpec((tb, NOUT), lambda i: (i, 0)),
        compiler_params=pltpu.CompilerParams(
            dimension_semantics=("parallel",)),
        cost_estimate=pl.CostEstimate(
            flops=flops, transcendentals=0, bytes_accessed=bytes_accessed),
    )(xk, T, b1cols, W2stack, b2cols)

    # Rearrange 'b e h w -> b (h w) e' == reshape of the lane-dense output.
    return out[:B].reshape(B, H2 * W2out, E)


# ----------------------------------------------------------------------------
# Pure-JAX reference (lax.conv) for sanity checking
# ----------------------------------------------------------------------------
def reference_forward(x, params):
    eps = 1e-5
    dn = ("NCHW", "OIHW", "NCHW")
    z = lax.conv_general_dilated(x, params["w1"], (1, 1), "VALID",
                                 dimension_numbers=dn)
    z = z + params["b1"].reshape(1, -1, 1, 1)
    scale = params["bn_gamma"] / jnp.sqrt(params["bn_var"] + eps)
    shift = params["bn_beta"] - params["bn_mean"] * scale
    z = z * scale.reshape(1, -1, 1, 1) + shift.reshape(1, -1, 1, 1)
    z = jnp.where(z > 0, z, 0.2 * z)
    z = lax.conv_general_dilated(z, params["w2"], (1, 5), "VALID",
                                 dimension_numbers=dn)
    z = z + params["b2"].reshape(1, -1, 1, 1)
    B, E, H2, W2 = z.shape
    return z.transpose(0, 2, 3, 1).reshape(B, H2 * W2, E)


# ----------------------------------------------------------------------------
if __name__ == "__main__":
    key = jax.random.PRNGKey(0)
    B, H, W = 16, 16, 75         # x: (B, 1, 16, 75) -> conv1 -> (B, 2, 16, 25)
    emb_size = 8                 # -> conv2 -> (B, 8, 1, 5) -> (B, 5, 8)

    k = jax.random.split(key, 8)
    params = {
        "w1": 0.1 * jax.random.normal(k[0], (2, 1, 1, 51), jnp.float32),
        "b1": 0.1 * jax.random.normal(k[1], (2,), jnp.float32),
        "bn_gamma": 1.0 + 0.1 * jax.random.normal(k[2], (2,), jnp.float32),
        "bn_beta": 0.1 * jax.random.normal(k[3], (2,), jnp.float32),
        "bn_mean": 0.1 * jax.random.normal(k[4], (2,), jnp.float32),
        "bn_var": jnp.abs(1.0 + 0.1 * jax.random.normal(k[5], (2,), jnp.float32)),
        "w2": 0.1 * jax.random.normal(k[6], (emb_size, 2, 16, 5), jnp.float32),
        "b2": 0.1 * jax.random.normal(k[7], (emb_size,), jnp.float32),
    }
    # TODO(synk): cls_token parameter exists in the PyTorch module but is unused
    # in forward, so it is not part of the kernel.
    cls_token = jax.random.normal(key, (1, 1, emb_size), jnp.float32)  # noqa: F841

    x = jax.random.normal(jax.random.PRNGKey(42), (B, 1, H, W), jnp.float32)

    fwd = jax.jit(functools.partial(patch_embedding_forward, tb=8))
    out = jax.block_until_ready(fwd(x, params))
    assert out.shape == (B, 5, emb_size), out.shape

    ref = reference_forward(x, params)
    assert jnp.allclose(out, ref, atol=2e-4, rtol=2e-4), "mismatch vs reference"

    print("KERNEL_OK")
</pallas_src>

<mosaic_0001>
module attributes {stable_mosaic.version = 11 : i64} {
  func.func @_patch_embed_kernel(%arg0: i32, %arg1: memref<128x75xf32, #tpu.memory_space<vmem>>, %arg2: memref<75x50xf32, #tpu.memory_space<vmem>>, %arg3: memref<1x50xf32, #tpu.memory_space<vmem>>, %arg4: memref<16x50x40xf32, #tpu.memory_space<vmem>>, %arg5: memref<1x40xf32, #tpu.memory_space<vmem>>, %arg6: memref<8x40xf32, #tpu.memory_space<vmem>>) attributes {dimension_semantics = [#tpu.dimension_semantics<parallel>], iteration_bounds = array<i64: 2>, scalar_prefetch = 0 : i64, scratch_operands = 0 : i64, tpu.core_type = #tpu.core_type<tc>, window_params = [{transform_indices = @transform_0, window_bounds = array<i64: 128, 75>}, {pipeline_mode = #tpu.pipeline_mode<synchronous>, transform_indices = @transform_1, window_bounds = array<i64: 75, 50>}, {pipeline_mode = #tpu.pipeline_mode<synchronous>, transform_indices = @transform_2, window_bounds = array<i64: 1, 50>}, {pipeline_mode = #tpu.pipeline_mode<synchronous>, transform_indices = @transform_3, window_bounds = array<i64: 16, 50, 40>}, {pipeline_mode = #tpu.pipeline_mode<synchronous>, transform_indices = @transform_4, window_bounds = array<i64: 1, 40>}, {transform_indices = @transform_5, window_bounds = array<i64: 8, 40>}]} {
    %c0 = arith.constant 0 : index
    %c0_0 = arith.constant 0 : index
    %0 = vector.load %arg1[%c0, %c0_0] : memref<128x75xf32, #tpu.memory_space<vmem>>, vector<128x75xf32>
    %c0_1 = arith.constant 0 : index
    %c0_2 = arith.constant 0 : index
    %1 = vector.load %arg2[%c0_1, %c0_2] : memref<75x50xf32, #tpu.memory_space<vmem>>, vector<75x50xf32>
    %cst = arith.constant dense<0.000000e+00> : vector<128x50xf32>
    %2 = tpu.matmul %0, %1, %cst {dimension_numbers = #tpu.dot_dimension_numbers<[1], [0], [0], [1], [0, 0, 1, 1], [], []>} : vector<128x75xf32>, vector<75x50xf32>, vector<128x50xf32> -> vector<128x50xf32>
    %c0_3 = arith.constant 0 : index
    %c0_4 = arith.constant 0 : index
    %3 = vector.load %arg3[%c0_3, %c0_4] : memref<1x50xf32, #tpu.memory_space<vmem>>, vector<1x50xf32>
    %4 = vector.broadcast %3 : vector<1x50xf32> to vector<128x50xf32>
    %5 = arith.addf %2, %4 : vector<128x50xf32>
    %cst_5 = arith.constant 0.000000e+00 : f32
    %6 = vector.broadcast %cst_5 : f32 to vector<128x50xf32>
    %7 = arith.cmpf ogt, %5, %6 : vector<128x50xf32>
    %cst_6 = arith.constant 2.000000e-01 : f32
    %8 = vector.broadcast %cst_6 : f32 to vector<128x50xf32>
    %9 = arith.mulf %8, %5 : vector<128x50xf32>
    %10 = arith.select %7, %5, %9 : vector<128x50xi1>, vector<128x50xf32>
    %cst_7 = arith.constant 0.000000e+00 : f32
    %11 = vector.broadcast %cst_7 : f32 to vector<8x40xf32>
    %12 = vector.extract_strided_slice %10 {offsets = [0, 0], sizes = [8, 50], strides = [1, 1]} : vector<128x50xf32> to vector<8x50xf32>
    %c0_8 = arith.constant 0 : index
    %c0_9 = arith.constant 0 : index
    %c0_10 = arith.constant 0 : index
    %13 = vector.load %arg4[%c0_8, %c0_9, %c0_10] : memref<16x50x40xf32, #tpu.memory_space<vmem>>, vector<1x50x40xf32>
    %14 = vector.shape_cast %13 : vector<1x50x40xf32> to vector<50x40xf32>
    %cst_11 = arith.constant dense<0.000000e+00> : vector<8x40xf32>
    %15 = tpu.matmul %12, %14, %cst_11 {dimension_numbers = #tpu.dot_dimension_numbers<[1], [0], [0], [1], [0, 0, 1, 1], [], []>} : vector<8x50xf32>, vector<50x40xf32>, vector<8x40xf32> -> vector<8x40xf32>
    %16 = arith.addf %11, %15 : vector<8x40xf32>
    %17 = vector.extract_strided_slice %10 {offsets = [8, 0], sizes = [8, 50], strides = [1, 1]} : vector<128x50xf32> to vector<8x50xf32>
    %c1 = arith.constant 1 : index
    %c0_12 = arith.constant 0 : index
    %c0_13 = arith.constant 0 : index
    %18 = vector.load %arg4[%c1, %c0_12, %c0_13] : memref<16x50x40xf32, #tpu.memory_space<vmem>>, vector<1x50x40xf32>
    %19 = vector.shape_cast %18 : vector<1x50x40xf32> to vector<50x40xf32>
    %cst_14 = arith.constant dense<0.000000e+00> : vector<8x40xf32>
    %20 = tpu.matmul %17, %19, %cst_14 {dimension_numbers = #tpu.dot_dimension_numbers<[1], [0], [0], [1], [0, 0, 1, 1], [], []>} : vector<8x50xf32>, vector<50x40xf32>, vector<8x40xf32> -> vector<8x40xf32>
    %21 = arith.addf %16, %20 : vector<8x40xf32>
    %22 = vector.extract_strided_slice %10 {offsets = [16, 0], sizes = [8, 50], strides = [1, 1]} : vector<128x50xf32> to vector<8x50xf32>
    %c2 = arith.constant 2 : index
    %c0_15 = arith.constant 0 : index
    %c0_16 = arith.constant 0 : index
    %23 = vector.load %arg4[%c2, %c0_15, %c0_16] : memref<16x50x40xf32, #tpu.memory_space<vmem>>, vector<1x50x40xf32>
    %24 = vector.shape_cast %23 : vector<1x50x40xf32> to vector<50x40xf32>
    %cst_17 = arith.constant dense<0.000000e+00> : vector<8x40xf32>
    %25 = tpu.matmul %22, %24, %cst_17 {dimension_numbers = #tpu.dot_dimension_numbers<[1], [0], [0], [1], [0, 0, 1, 1], [], []>} : vector<8x50xf32>, vector<50x40xf32>, vector<8x40xf32> -> vector<8x40xf32>
    %26 = arith.addf %21, %25 : vector<8x40xf32>
    %27 = vector.extract_strided_slice %10 {offsets = [24, 0], sizes = [8, 50], strides = [1, 1]} : vector<128x50xf32> to vector<8x50xf32>
    %c3 = arith.constant 3 : index
    %c0_18 = arith.constant 0 : index
    %c0_19 = arith.constant 0 : index
    %28 = vector.load %arg4[%c3, %c0_18, %c0_19] : memref<16x50x40xf32, #tpu.memory_space<vmem>>, vector<1x50x40xf32>
    %29 = vector.shape_cast %28 : vector<1x50x40xf32> to vector<50x40xf32>
    %cst_20 = arith.constant dense<0.000000e+00> : vector<8x40xf32>
    %30 = tpu.matmul %27, %29, %cst_20 {dimension_numbers = #tpu.dot_dimension_numbers<[1], [0], [0], [1], [0, 0, 1, 1], [], []>} : vector<8x50xf32>, vector<50x40xf32>, vector<8x40xf32> -> vector<8x40xf32>
    %31 = arith.addf %26, %30 : vector<8x40xf32>
    %32 = vector.extract_strided_slice %10 {offsets = [32, 0], sizes = [8, 50], strides = [1, 1]} : vector<128x50xf32> to vector<8x50xf32>
    %c4 = arith.constant 4 : index
    %c0_21 = arith.constant 0 : index
    %c0_22 = arith.constant 0 : index
    %33 = vector.load %arg4[%c4, %c0_21, %c0_22] : memref<16x50x40xf32, #tpu.memory_space<vmem>>, vector<1x50x40xf32>
    %34 = vector.shape_cast %33 : vector<1x50x40xf32> to vector<50x40xf32>
    %cst_23 = arith.constant dense<0.000000e+00> : vector<8x40xf32>
    %35 = tpu.matmul %32, %34, %cst_23 {dimension_numbers = #tpu.dot_dimension_numbers<[1], [0], [0], [1], [0, 0, 1, 1], [], []>} : vector<8x50xf32>, vector<50x40xf32>, vector<8x40xf32> -> vector<8x40xf32>
    %36 = arith.addf %31, %35 : vector<8x40xf32>
    %37 = vector.extract_strided_slice %10 {offsets = [40, 0], sizes = [8, 50], strides = [1, 1]} : vector<128x50xf32> to vector<8x50xf32>
    %c5 = arith.constant 5 : index
    %c0_24 = arith.constant 0 : index
    %c0_25 = arith.constant 0 : index
    %38 = vector.load %arg4[%c5, %c0_24, %c0_25] : memref<16x50x40xf32, #tpu.memory_space<vmem>>, vector<1x50x40xf32>
    %39 = vector.shape_cast %38 : vector<1x50x40xf32> to vector<50x40xf32>
    %cst_26 = arith.constant dense<0.000000e+00> : vector<8x40xf32>
    %40 = tpu.matmul %37, %39, %cst_26 {dimension_numbers = #tpu.dot_dimension_numbers<[1], [0], [0], [1], [0, 0, 1, 1], [], []>} : vector<8x50xf32>, vector<50x40xf32>, vector<8x40xf32> -> vector<8x40xf32>
    %41 = arith.addf %36, %40 : vector<8x40xf32>
    %42 = vector.extract_strided_slice %10 {offsets = [48, 0], sizes = [8, 50], strides = [1, 1]} : vector<128x50xf32> to vector<8x50xf32>
    %c6 = arith.constant 6 : index
    %c0_27 = arith.constant 0 : index
    %c0_28 = arith.constant 0 : index
    %43 = vector.load %arg4[%c6, %c0_27, %c0_28] : memref<16x50x40xf32, #tpu.memory_space<vmem>>, vector<1x50x40xf32>
    %44 = vector.shape_cast %43 : vector<1x50x40xf32> to vector<50x40xf32>
    %cst_29 = arith.constant dense<0.000000e+00> : vector<8x40xf32>
    %45 = tpu.matmul %42, %44, %cst_29 {dimension_numbers = #tpu.dot_dimension_numbers<[1], [0], [0], [1], [0, 0, 1, 1], [], []>} : vector<8x50xf32>, vector<50x40xf32>, vector<8x40xf32> -> vector<8x40xf32>
    %46 = arith.addf %41, %45 : vector<8x40xf32>
    %47 = vector.extract_strided_slice %10 {offsets = [56, 0], sizes = [8, 50], strides = [1, 1]} : vector<128x50xf32> to vector<8x50xf32>
    %c7 = arith.constant 7 : index
    %c0_30 = arith.constant 0 : index
    %c0_31 = arith.constant 0 : index
    %48 = vector.load %arg4[%c7, %c0_30, %c0_31] : memref<16x50x40xf32, #tpu.memory_space<vmem>>, vector<1x50x40xf32>
    %49 = vector.shape_cast %48 : vector<1x50x40xf32> to vector<50x40xf32>
    %cst_32 = arith.constant dense<0.000000e+00> : vector<8x40xf32>
    %50 = tpu.matmul %47, %49, %cst_32 {dimension_numbers = #tpu.dot_dimension_numbers<[1], [0], [0], [1], [0, 0, 1, 1], [], []>} : vector<8x50xf32>, vector<50x40xf32>, vector<8x40xf32> -> vector<8x40xf32>
    %51 = arith.addf %46, %50 : vector<8x40xf32>
    %52 = vector.extract_strided_slice %10 {offsets = [64, 0], sizes = [8, 50], strides = [1, 1]} : vector<128x50xf32> to vector<8x50xf32>
    %c8 = arith.constant 8 : index
    %c0_33 = arith.constant 0 : index
    %c0_34 = arith.constant 0 : index
    %53 = vector.load %arg4[%c8, %c0_33, %c0_34] : memref<16x50x40xf32, #tpu.memory_space<vmem>>, vector<1x50x40xf32>
    %54 = vector.shape_cast %53 : vector<1x50x40xf32> to vector<50x40xf32>
    %cst_35 = arith.constant dense<0.000000e+00> : vector<8x40xf32>
    %55 = tpu.matmul %52, %54, %cst_35 {dimension_numbers = #tpu.dot_dimension_numbers<[1], [0], [0], [1], [0, 0, 1, 1], [], []>} : vector<8x50xf32>, vector<50x40xf32>, vector<8x40xf32> -> vector<8x40xf32>
    %56 = arith.addf %51, %55 : vector<8x40xf32>
    %57 = vector.extract_strided_slice %10 {offsets = [72, 0], sizes = [8, 50], strides = [1, 1]} : vector<128x50xf32> to vector<8x50xf32>
    %c9 = arith.constant 9 : index
    %c0_36 = arith.constant 0 : index
    %c0_37 = arith.constant 0 : index
    %58 = vector.load %arg4[%c9, %c0_36, %c0_37] : memref<16x50x40xf32, #tpu.memory_space<vmem>>, vector<1x50x40xf32>
    %59 = vector.shape_cast %58 : vector<1x50x40xf32> to vector<50x40xf32>
    %cst_38 = arith.constant dense<0.000000e+00> : vector<8x40xf32>
    %60 = tpu.matmul %57, %59, %cst_38 {dimension_numbers = #tpu.dot_dimension_numbers<[1], [0], [0], [1], [0, 0, 1, 1], [], []>} : vector<8x50xf32>, vector<50x40xf32>, vector<8x40xf32> -> vector<8x40xf32>
    %61 = arith.addf %56, %60 : vector<8x40xf32>
    %62 = vector.extract_strided_slice %10 {offsets = [80, 0], sizes = [8, 50], strides = [1, 1]} : vector<128x50xf32> to vector<8x50xf32>
    %c10 = arith.constant 10 : index
    %c0_39 = arith.constant 0 : index
    %c0_40 = arith.constant 0 : index
    %63 = vector.load %arg4[%c10, %c0_39, %c0_40] : memref<16x50x40xf32, #tpu.memory_space<vmem>>, vector<1x50x40xf32>
    %64 = vector.shape_cast %63 : vector<1x50x40xf32> to vector<50x40xf32>
    %cst_41 = arith.constant dense<0.000000e+00> : vector<8x40xf32>
    %65 = tpu.matmul %62, %64, %cst_41 {dimension_numbers = #tpu.dot_dimension_numbers<[1], [0], [0], [1], [0, 0, 1, 1], [], []>} : vector<8x50xf32>, vector<50x40xf32>, vector<8x40xf32> -> vector<8x40xf32>
    %66 = arith.addf %61, %65 : vector<8x40xf32>
    %67 = vector.extract_strided_slice %10 {offsets = [88, 0], sizes = [8, 50], strides = [1, 1]} : vector<128x50xf32> to vector<8x50xf32>
    %c11 = arith.constant 11 : index
    %c0_42 = arith.constant 0 : index
    %c0_43 = arith.constant 0 : index
    %68 = vector.load %arg4[%c11, %c0_42, %c0_43] : memref<16x50x40xf32, #tpu.memory_space<vmem>>, vector<1x50x40xf32>
    %69 = vector.shape_cast %68 : vector<1x50x40xf32> to vector<50x40xf32>
    %cst_44 = arith.constant dense<0.000000e+00> : vector<8x40xf32>
    %70 = tpu.matmul %67, %69, %cst_44 {dimension_numbers = #tpu.dot_dimension_numbers<[1], [0], [0], [1], [0, 0, 1, 1], [], []>} : vector<8x50xf32>, vector<50x40xf32>, vector<8x40xf32> -> vector<8x40xf32>
    %71 = arith.addf %66, %70 : vector<8x40xf32>
    %72 = vector.extract_strided_slice %10 {offsets = [96, 0], sizes = [8, 50], strides = [1, 1]} : vector<128x50xf32> to vector<8x50xf32>
    %c12 = arith.constant 12 : index
    %c0_45 = arith.constant 0 : index
    %c0_46 = arith.constant 0 : index
    %73 = vector.load %arg4[%c12, %c0_45, %c0_46] : memref<16x50x40xf32, #tpu.memory_space<vmem>>, vector<1x50x40xf32>
    %74 = vector.shape_cast %73 : vector<1x50x40xf32> to vector<50x40xf32>
    %cst_47 = arith.constant dense<0.000000e+00> : vector<8x40xf32>
    %75 = tpu.matmul %72, %74, %cst_47 {dimension_numbers = #tpu.dot_dimension_numbers<[1], [0], [0], [1], [0, 0, 1, 1], [], []>} : vector<8x50xf32>, vector<50x40xf32>, vector<8x40xf32> -> vector<8x40xf32>
    %76 = arith.addf %71, %75 : vector<8x40xf32>
    %77 = vector.extract_strided_slice %10 {offsets = [104, 0], sizes = [8, 50], strides = [1, 1]} : vector<128x50xf32> to vector<8x50xf32>
    %c13 = arith.constant 13 : index
    %c0_48 = arith.constant 0 : index
    %c0_49 = arith.constant 0 : index
    %78 = vector.load %arg4[%c13, %c0_48, %c0_49] : memref<16x50x40xf32, #tpu.memory_space<vmem>>, vector<1x50x40xf32>
    %79 = vector.shape_cast %78 : vector<1x50x40xf32> to vector<50x40xf32>
    %cst_50 = arith.constant dense<0.000000e+00> : vector<8x40xf32>
    %80 = tpu.matmul %77, %79, %cst_50 {dimension_numbers = #tpu.dot_dimension_numbers<[1], [0], [0], [1], [0, 0, 1, 1], [], []>} : vector<8x50xf32>, vector<50x40xf32>, vector<8x40xf32> -> vector<8x40xf32>
    %81 = arith.addf %76, %80 : vector<8x40xf32>
    %82 = vector.extract_strided_slice %10 {offsets = [112, 0], sizes = [8, 50], strides = [1, 1]} : vector<128x50xf32> to vector<8x50xf32>
    %c14 = arith.constant 14 : index
    %c0_51 = arith.constant 0 : index
    %c0_52 = arith.constant 0 : index
    %83 = vector.load %arg4[%c14, %c0_51, %c0_52] : memref<16x50x40xf32, #tpu.memory_space<vmem>>, vector<1x50x40xf32>
    %84 = vector.shape_cast %83 : vector<1x50x40xf32> to vector<50x40xf32>
    %cst_53 = arith.constant dense<0.000000e+00> : vector<8x40xf32>
    %85 = tpu.matmul %82, %84, %cst_53 {dimension_numbers = #tpu.dot_dimension_numbers<[1], [0], [0], [1], [0, 0, 1, 1], [], []>} : vector<8x50xf32>, vector<50x40xf32>, vector<8x40xf32> -> vector<8x40xf32>
    %86 = arith.addf %81, %85 : vector<8x40xf32>
    %87 = vector.extract_strided_slice %10 {offsets = [120, 0], sizes = [8, 50], strides = [1, 1]} : vector<128x50xf32> to vector<8x50xf32>
    %c15 = arith.constant 15 : index
    %c0_54 = arith.constant 0 : index
    %c0_55 = arith.constant 0 : index
    %88 = vector.load %arg4[%c15, %c0_54, %c0_55] : memref<16x50x40xf32, #tpu.memory_space<vmem>>, vector<1x50x40xf32>
    %89 = vector.shape_cast %88 : vector<1x50x40xf32> to vector<50x40xf32>
    %cst_56 = arith.constant dense<0.000000e+00> : vector<8x40xf32>
    %90 = tpu.matmul %87, %89, %cst_56 {dimension_numbers = #tpu.dot_dimension_numbers<[1], [0], [0], [1], [0, 0, 1, 1], [], []>} : vector<8x50xf32>, vector<50x40xf32>, vector<8x40xf32> -> vector<8x40xf32>
    %91 = arith.addf %86, %90 : vector<8x40xf32>
    %c0_57 = arith.constant 0 : index
    %c0_58 = arith.constant 0 : index
    %92 = vector.load %arg5[%c0_57, %c0_58] : memref<1x40xf32, #tpu.memory_space<vmem>>, vector<1x40xf32>
    %93 = vector.broadcast %92 : vector<1x40xf32> to vector<8x40xf32>
    %94 = arith.addf %91, %93 : vector<8x40xf32>
    %c0_59 = arith.constant 0 : index
    %c0_60 = arith.constant 0 : index
    %95 = vector.load %arg6[%c0_59, %c0_60] : memref<8x40xf32, #tpu.memory_space<vmem>>, vector<8x40xf32>
    tpu.vector_store %arg6[%c0_59, %c0_60], %94 {strides = array<i32>} : memref<8x40xf32, #tpu.memory_space<vmem>>, vector<8x40xf32>,
    return
  }
  func.func @transform_0(%arg0: i32) -> (i32, i32) {
    %c0_i32 = arith.constant 0 : i32
    %c0_i32_0 = arith.constant 0 : i32
    return %arg0, %c0_i32 : i32, i32
  }
  func.func @transform_1(%arg0: i32) -> (i32, i32) {
    %c0_i32 = arith.constant 0 : i32
    %c0_i32_0 = arith.constant 0 : i32
    %c0_i32_1 = arith.constant 0 : i32
    return %c0_i32, %c0_i32_0 : i32, i32
  }
  func.func @transform_2(%arg0: i32) -> (i32, i32) {
    %c0_i32 = arith.constant 0 : i32
    %c0_i32_0 = arith.constant 0 : i32
    %c0_i32_1 = arith.constant 0 : i32
    return %c0_i32, %c0_i32_0 : i32, i32
  }
  func.func @transform_3(%arg0: i32) -> (i32, i32, i32) {
    %c0_i32 = arith.constant 0 : i32
    %c0_i32_0 = arith.constant 0 : i32
    %c0_i32_1 = arith.constant 0 : i32
    %c0_i32_2 = arith.constant 0 : i32
    return %c0_i32, %c0_i32_0, %c0_i32_1 : i32, i32, i32
  }
  func.func @transform_4(%arg0: i32) -> (i32, i32) {
    %c0_i32 = arith.constant 0 : i32
    %c0_i32_0 = arith.constant 0 : i32
    %c0_i32_1 = arith.constant 0 : i32
    return %c0_i32, %c0_i32_0 : i32, i32
  }
  func.func @transform_5(%arg0: i32) -> (i32, i32) {
    %c0_i32 = arith.constant 0 : i32
    %c0_i32_0 = arith.constant 0 : i32
    return %arg0, %c0_i32 : i32, i32
  }
}

</mosaic_0001>

<bundles_post_ra>
// kernel: tile.18
= control target key start
LH: loop header
LB: loop body
LE: loop exit
PB: predicated region body
PF: predicated region fallthrough
CT: control target
= control target key end

     0   :  { %s22_s0 = inlined_call_operand.vmem [shape: f32[8], index: 0, kind: input, shape index: {}]   ;;  %s23_s1 = inlined_call_operand.vmem [shape: f32[5,8], index: 1, kind: output, shape index: {}]  }
   0x1   :  { %v4_v0 = vld [vmem:[%s22_s0] ss:$0 sm:$0xff] }
   0x2   :  { %5 = vst [vmem:[%s23_s1] sm:$0xff] %v4_v0 }

// kernel: tile.19
= control target key start
LH: loop header
LB: loop body
LE: loop exit
PB: predicated region body
PF: predicated region fallthrough
CT: control target
= control target key end

     0   :  { %s43_s10 = smov 32   ;;  %s44_s11 = smov 16   ;;  %vm3_vm0 = vcmask 64512   ;;  %vm9_vm1 = vcmask 326912   ;;  %vm15_vm2 = vcmask 261312   ;;  %vm21_vm3 = vcmask 195712   ;;  %s75_s0 = inlined_call_operand.vmem [shape: f32[5,8], index: 0, kind: input, shape index: {}]   ;;  %s76_s1 = inlined_call_operand.vmem [shape: f32[1,40], index: 1, kind: output, shape index: {}]  }
   0x1   :  { %v35_v0 = vld [vmem:[%s75_s0 + $0x4] sm:$0x1]   ;;  %v37_v1 = vld [vmem:[%s75_s0 + $0x2] sm:$0x1]   ;;  %v36_v2 = vld [vmem:[%s75_s0 + $0x3] sm:$0x1]  }
   0x2   :  { %7 = vrot.lane.b32.xlu0 %v35_v0, %s43_s10  ;;  %19 = vrot.lane.b32.xlu1 %v37_v1, %s44_s11  ;;  %v38_v3 = vld [vmem:[%s75_s0 + $0x1] sm:$0x1]   ;;  %v2_v4 = vld [vmem:[%s75_s0] sm:$0x1]   ;;  %s45_s0 = smov 24   ;;  %s46_s18 = smov 8  }
   0x3   :  { %4 = vst.msk [vmem:[#allocation0] sm:$0x1] %vm3_vm0, %v2_v4   ;;  %vm27_vm4 = vcmask 130112  }
   0x6   :  { %13 = vrot.lane.b32.xlu0 %v36_v2, %s45_s0  ;;  %25 = vrot.lane.b32.xlu1 %v38_v3, %s46_s18 }
  0x74   :  { %v8_v5 = vpop.permute.xlu0 %7   ;;  %v20_v6 = vpop.permute.xlu1 %19  }
  0x75   :  { %10 = vst.msk [vmem:[#allocation0] sm:$0x1] %vm9_vm1, %v8_v5  }
  0x78   :  { %v14_v7 = vpop.permute.xlu0 %13   ;;  %v26_v8 = vpop.permute.xlu1 %25  }
  0x79   :  { %16 = vst.msk [vmem:[#allocation0] sm:$0x1] %vm15_vm2, %v14_v7  }
  0x7a   :  { %22 = vst.msk [vmem:[#allocation0] sm:$0x1] %vm21_vm3, %v20_v6  }
  0x7b   :  { %28 = vst.msk [vmem:[#allocation0] sm:$0x1] %vm27_vm4, %v26_v8  }
  0x82   :  { %v32_v9 = vld [vmem:[#allocation0] sm:$0x1] }
  0x83   :  { %34 = vst [vmem:[%s76_s1] sm:$0x1] %v32_v9 }

// kernel: patch_embedding_forward.1
= control target key start
LH: loop header
LB: loop body
LE: loop exit
PB: predicated region body
PF: predicated region fallthrough
CT: control target
= control target key end

     0   :  { %s2782_s18 = smov 0   ;;  %s3402_s0 = inlined_call_operand.vmem [shape: f32[256,75], index: 0, kind: input, shape index: {}]   ;;  %s3403_s1 = inlined_call_operand.vmem [shape: f32[75,50], index: 1, kind: input, shape index: {}]   ;;  %s3404_s2 = inlined_call_operand.vmem [shape: f32[1,50], index: 2, kind: input, shape index: {}]   ;;  %s3405_s3 = inlined_call_operand.vmem [shape: f32[16,50,40], index: 3, kind: input, shape index: {}]   ;;  %s3406_s4 = inlined_call_operand.vmem [shape: f32[1,40], index: 4, kind: input, shape index: {}]   ;;  %s3407_s5 = inlined_call_operand.vmem [shape: f32[16,40], index: 5, kind: output, shape index: {}]  }
   0x1 LB: > { %s2788_s19 = sadd.s32 4294967295, %s2746_s18   ;;  %p1930_p0 = scmp.ge.s32.totalorder %s2746_s18, 1  ;;  %s2746_s18 = sphi %s2782_s18, %s15_s18  }
   0x2   : > { %p188_p1 = scmp.lt.s32.totalorder %s2746_s18, 3 }
   0x4   : > { %p189_p2 = pnand %p1930_p0, %p188_p1 }
   0x5   : > { %v241_v0 = vld [vmem:[%s3403_s1] sm:$0xff] (!%p189_p2)  ;;  %v242_v1 = vld [vmem:[%s3403_s1 + $0x8] sm:$0xff] (!%p189_p2)  ;;  %v243_v2 = vld [vmem:[%s3403_s1 + $0x10] sm:$0xff] (!%p189_p2)  ;;  %s1931_s26 = sshll.u32 (!%p189_p2), %s2788_s19, 4  ;;  %v2748_v8 = vmov (!%p189_p2), 0.0|0.0   ;;  %vm258_vm0 = vcmask (!%p189_p2), 613376  }
   0x6   : > { %192 = sbr.rel (%p189_p2) target bundleno = 576 (0x240), region = 40  ;;  %v2562_v3 = vpack.c.bf16 (!%p189_p2), %v242_v1, %v241_v0  ;;  %v244_v4 = vld [vmem:[%s3403_s1 + $0x18] sm:$0xff] (!%p189_p2)  ;;  %p216_p3 = scmp.lt.s32.totalorder (!%p189_p2), %s1931_s26, 31  ;;  %v245_v6 = vld [vmem:[%s3403_s1 + $0x20] sm:$0xff] (!%p189_p2)  ;;  %v246_v7 = vld [vmem:[%s3403_s1 + $0x28] sm:$0xff] (!%p189_p2)  ;;  %2584 = vmatprep.subr.bf16.mxu1 (!%p189_p2), %v2748_v8  ;;  %vm307_vm1 = vcmask (!%p189_p2), 1042432  }
   0x7   : > { %v2566_v5 = vpack.c.bf16 (!%p189_p2), %v244_v4, %v243_v2  ;;  %v1952_v9 = vld [vmem:[%s3405_s3 + $0x38] sm:$0xff] (!%p189_p2)  ;;  %v1953_v10 = vld [vmem:[%s3405_s3 + $0x40] sm:$0xff] (!%p189_p2)  ;;  %v1954_v11 = vld [vmem:[%s3405_s3 + $0x48] sm:$0xff] (!%p189_p2)  ;;  %v2570_v13 = vpack.c.bf16 (!%p189_p2), %v246_v7, %v245_v6  ;;  %vm2749_vm2 = vmmov (!%p189_p2), 1   ;;  %v2750_v41 = vmov (!%p189_p2), 0.0   ;;  %p221_p4 = scmp.lt.s32.totalorder (!%p189_p2), %s2788_s19, 1 }
   0x8   : > { %2563 = vmatprep.subr.bf16.mxu0 (!%p189_p2), %v2562_v3  ;;  %v1955_v12 = vld [vmem:[%s3405_s3 + $0x50] sm:$0xff] (!%p189_p2)  ;;  %v2585_v14 = vpack.c.bf16 (!%p189_p2), %v1953_v10, %v1952_v9  ;;  %v248_v16 = vld [vmem:[%s3403_s1 + $0x38] sm:$0xff] (!%p189_p2)  ;;  %v249_v20 = vld [vmem:[%s3403_s1 + $0x40] sm:$0xff] (!%p189_p2)  ;;  %vm523_vm4 = vcmask (!%p189_p2), 1041408   ;;  %vm2751_vm5 = vmmov (!%p189_p2), 0   ;;  %vm519_vm7 = vcmask (!%p189_p2), 408576  }
   0x9   : > { %2565 = vmatpush3.bf16.msra.mxu0 (!%p189_p2), %v2562_v3  ;;  %v247_v15 = vld [vmem:[%s3403_s1 + $0x30] sm:$0xff] (!%p189_p2)  ;;  %v2588_v18 = vpack.c.bf16 (!%p189_p2), %v1955_v12, %v1954_v11  ;;  %v250_v21 = vld [vmem:[%s3403_s1 + $0x48] sm:$0x7] (!%p189_p2)  ;;  %vm2579_vm3 = vmpackc.low (!%p189_p2), %vm307_vm1, %vm2749_vm2  ;;  %2304 = vmatprep.mubr.msk.f32.mxu1 (!%p189_p2), %vm2751_vm5, %v2750_v41 }
   0xa   : > { %2567 = vmatprep.subr.bf16.mxu0 (!%p189_p2), %v2566_v5  ;;  %2586 = vmatpush3.bf16.msra.mxu1 (!%p189_p2), %v2585_v14  ;;  %v2574_v19 = vpack.c.bf16 (!%p189_p2), %v248_v16, %v247_v15  ;;  %v2578_v22 = vpack.c.bf16 (!%p189_p2), %v250_v21, %v249_v20  ;;  %v1956_v38 = vld [vmem:[%s3405_s3 + $0x58] sm:$0xff] (!%p189_p2)  ;;  %v1957_v39 = vld [vmem:[%s3405_s3 + $0x60] sm:$0xff] (!%p189_p2)  ;;  %v1958_v42 = vld [vmem:[%s3405_s3 + $0x68] sm:$0x3] (!%p189_p2) }
   0xb   : > { %2587 = vmatprep.subr.bf16.mxu1 (!%p189_p2), %v2748_v8  ;;  %v2591_v40 = vpack.c.bf16 (!%p189_p2), %v1957_v39, %v1956_v38  ;;  %v1972_v43 = vld [vmem:[%s3405_s3 + $0xa8] sm:$0xff] (!%p189_p2)  ;;  %v1973_v44 = vld [vmem:[%s3405_s3 + $0xb0] sm:$0xff] (!%p189_p2)  ;;  %v1974_v46 = vld [vmem:[%s3405_s3 + $0xb8] sm:$0xff] (!%p189_p2) }
   0xc   : > { %v2612_v45 = vpack.c.bf16 (!%p189_p2), %v1973_v44, %v1972_v43  ;;  %v1975_v47 = vld [vmem:[%s3405_s3 + $0xc0] sm:$0xff] (!%p189_p2)  ;;  %v1976_v49 = vld [vmem:[%s3405_s3 + $0xc8] sm:$0xff] (!%p189_p2)  ;;  %v1977_v50 = vld [vmem:[%s3405_s3 + $0xd0] sm:$0xff] (!%p189_p2) }
   0xd   : > { %s3409_s26 = smov (!%p216_p3, %s1931_s26), 31  ;;  %2569 = vmatpush3.bf16.msra.mxu0 %v2566_v5  ;;  %v2615_v48 = vpack.c.bf16 %v1975_v47, %v1974_v46  ;;  %v2618_v51 = vpack.c.bf16 %v1977_v50, %v1976_v49  ;;  %v1978_v52 = vld [vmem:[%s3405_s3 + $0xd8] sm:$0x3]  ;;  %v2921_v53 = vld [vmem:[%s3404_s2] ss:$0 sm:$0xff]  ;;  %v505_v56 = vld [vmem:[%s3405_s3 + $0x8] sm:$0xff] }
   0xe   : > { %s1932_s16 = sshll.u32 %s3409_s26, 3  ;;  %2571 = vmatprep.subr.bf16.mxu0 %v2570_v13  ;;  %2589 = vmatpush3.bf16.msra.mxu1 %v2588_v18  ;;  %v504_v55 = vld [vmem:[%s3405_s3] sm:$0xff]  ;;  %v506_v61 = vld [vmem:[%s3405_s3 + $0x10] sm:$0xff]  ;;  %v507_v62 = vld [vmem:[%s3405_s3 + $0x18] sm:$0xff]  ;;  %s3411_s19 = smov (!%p221_p4, %s2788_s19), 1 }
   0xf   : > { %s2833_s25 = scalar_lea.vmem %s3402_s0, %s1932_s16  ;;  %2590 = vmatprep.subr.bf16.mxu1 %v2748_v8  ;;  %v2594_v60 = vpack.c.bf16 %v505_v56, %v504_v55  ;;  %v1990_v0 = vld [vmem:[%s3405_s3 + $0x118] sm:$0xff]  ;;  %v1991_v1 = vld [vmem:[%s3405_s3 + $0x120] sm:$0xff]  ;;  %v2597_v5 = vpack.c.bf16 %v507_v62, %v506_v61  ;;  %v509_v10 = vld [vmem:[%s3405_s3 + $0x28] sm:$0xff]  ;;  %s1933_s16 = sshll.u32 %s3411_s19, 3 }
  0x10   : > { %v225_v17 = vld [vmem:[%s2833_s25] sm:$0xff]  ;;  %v226_v23 = vld [vmem:[%s2833_s25 + $0x8] sm:$0xff]  ;;  %v227_v24 = vld [vmem:[%s2833_s25 + $0x10] sm:$0xff]  ;;  %v2630_v9 = vpack.c.bf16 %v1991_v1, %v1990_v0  ;;  %s224_s23 = scalar_lea.vmem %s3407_s5, %s1933_s16 }
  0x11   : > { %2266 = vmatprep.mubr.msk.f32.mxu0 %vm258_vm0, %v225_v17  ;;  %2573 = vmatpush3.bf16.msra.mxu0 %v2570_v13  ;;  %v228_v25 = vld [vmem:[%s2833_s25 + $0x18] sm:$0xff]  ;;  %v229_v26 = vld [vmem:[%s2833_s25 + $0x20] sm:$0xff]  ;;  %v230_v27 = vld [vmem:[%s2833_s25 + $0x28] sm:$0xff] }
  0x12   : > { %2575 = vmatprep.subr.bf16.mxu0 %v2574_v19  ;;  %v231_v28 = vld [vmem:[%s2833_s25 + $0x30] sm:$0xff]  ;;  %v232_v29 = vld [vmem:[%s2833_s25 + $0x38] sm:$0xff]  ;;  %v233_v30 = vld [vmem:[%s2833_s25 + $0x40] sm:$0xff]  ;;  %2592 = vmatpush3.bf16.msra.mxu1 %v2591_v40 }
  0x13   : > { %v234_v31 = vld [vmem:[%s2833_s25 + $0x48] sm:$0xff]  ;;  %v235_v32 = vld [vmem:[%s2833_s25 + $0x50] sm:$0xff]  ;;  %v236_v33 = vld [vmem:[%s2833_s25 + $0x58] sm:$0xff]  ;;  %2302 = vmatprep.subr.mxu1 %v2750_v41 }
  0x14   : > { %v237_v34 = vld [vmem:[%s2833_s25 + $0x60] sm:$0xff]  ;;  %v238_v35 = vld [vmem:[%s2833_s25 + $0x68] sm:$0xff]  ;;  %v239_v36 = vld [vmem:[%s2833_s25 + $0x70] sm:$0xff] }
  0x15   : > { %2577 = vmatpush3.bf16.msra.mxu0 %v2574_v19  ;;  %v240_v37 = vld [vmem:[%s2833_s25 + $0x78] sm:$0xff]  ;;  %v508_v6 = vld [vmem:[%s3405_s3 + $0x20] sm:$0xff]  ;;  %v1992_v11 = vld [vmem:[%s3405_s3 + $0x128] sm:$0xff] }
  0x16   : > { %2580 = vmatprep.subr.msk.bf16.mxu0 %vm2579_vm3, %v2578_v22  ;;  %2303 = vmatpush3.msk.msra.mxu1 %vm523_vm4, %v1958_v42  ;;  %v1993_v12 = vld [vmem:[%s3405_s3 + $0x130] sm:$0xff]  ;;  %v2600_v17 = vpack.c.bf16 %v509_v10, %v508_v6  ;;  %v1994_v19 = vld [vmem:[%s3405_s3 + $0x138] sm:$0xff]  ;;  %v1995_v20 = vld [vmem:[%s3405_s3 + $0x140] sm:$0xff] }
  0x17   : > { %2593 = vmatprep.subr.bf16.mxu1 %v2748_v8  ;;  %v2633_v18 = vpack.c.bf16 %v1993_v12, %v1992_v11  ;;  %v1996_v39 = vld [vmem:[%s3405_s3 + $0x148] sm:$0x3]  ;;  %v1967_v43 = vld [vmem:[%s3405_s3 + $0x90] sm:$0xff]  ;;  %v1968_v44 = vld [vmem:[%s3405_s3 + $0x98] sm:$0xff] }
  0x18   : > { %v2011_v49 = vld [vmem:[%s3405_s3 + $0x1a0] sm:$0xff]  ;;  %v1984_v11 = vld [vmem:[%s3405_s3 + $0xf8] sm:$0xff] }
  0x19   : > { %2583 = vmatpush3.bf16.msk.msra.mxu0 %vm2579_vm3, %v2578_v22  ;;  %v1981_v62 = vld [vmem:[%s3405_s3 + $0xe0] sm:$0xff]  ;;  %v2026_v12 = vld [vmem:[%s3405_s3 + $0x1f8] sm:$0xff] }
  0x1a   : > { %2611 = vmatprep.subr.bf16.mxu0 %v2748_v8 }
  0x1c   : > { %2267 = vmatmul.mubr.msk.f32.vlgmr.msra.gmra.mrb[0].mxu0 %vm258_vm0, %v226_v23 }
  0x1d   : > { %2269 = vmatprep.mubr.msk.f32.mxu0 %vm258_vm0, %v227_v24  ;;  %2613 = vmatpush3.bf16.msra.mxu0 %v2612_v45  ;;  %v1963_v24 = vld [vmem:[%s3405_s3 + $0x70] sm:$0xff] }
  0x1e   : > { %2614 = vmatprep.subr.bf16.mxu0 %v2748_v8 }
  0x20   : > { %2270 = vmatmul.mubr.msk.f32.gmra.mrb[2].mxu0 %vm258_vm0, %v228_v25  ;;  %v1964_v25 = vld [vmem:[%s3405_s3 + $0x78] sm:$0xff] }
  0x21   : > { %2272 = vmatprep.mubr.msk.f32.mxu0 %vm258_vm0, %v229_v26  ;;  %2616 = vmatpush3.bf16.msra.mxu0 %v2615_v48  ;;  %v2010_v48 = vld [vmem:[%s3405_s3 + $0x198] sm:$0xff] }
  0x22   : > { %2617 = vmatprep.subr.bf16.mxu0 %v2748_v8  ;;  %v2651_v55 = vpack.c.bf16 %v2011_v49, %v2010_v48 }
  0x24   : > { %2273 = vmatmul.mubr.msk.f32.gmra.mrb[4].mxu0 %vm258_vm0, %v230_v27  ;;  %v2636_v27 = vpack.c.bf16 %v1995_v20, %v1994_v19 }
  0x25   : > { %2275 = vmatprep.mubr.msk.f32.mxu0 %vm258_vm0, %v231_v28  ;;  %2619 = vmatpush3.bf16.msra.mxu0 %v2618_v51  ;;  %v510_v28 = vld [vmem:[%s3405_s3 + $0x30] sm:$0x3]  ;;  %v2609_v51 = vpack.c.bf16 %v1968_v44, %v1967_v43 }
  0x26   : > { %2353 = vmatprep.subr.mxu0 %v2750_v41  ;;  %v2045_v43 = vld [vmem:[%s3405_s3 + $0x270] sm:$0xff] }
  0x28   : > { %2276 = vmatmul.mubr.msk.f32.gmra.mrb[6].mxu0 %vm258_vm0, %v232_v29 }
  0x29   : > { %2278 = vmatprep.mubr.msk.f32.mxu0 %vm258_vm0, %v233_v30  ;;  %2354 = vmatpush3.msk.msra.mxu0 %vm523_vm4, %v1978_v52  ;;  %v2603_v30 = vpack.c.bf16 %v1964_v25, %v1963_v24  ;;  %v2029_v24 = vld [vmem:[%s3405_s3 + $0x210] sm:$0xff] }
  0x2a   : > { %2629 = vmatprep.subr.bf16.mxu0 %v2748_v8 }
  0x2c   : > { %2279 = vmatmul.mubr.msk.f32.gmra.mrb[8].mxu0 %vm258_vm0, %v234_v31  ;;  %v1965_v31 = vld [vmem:[%s3405_s3 + $0x80] sm:$0xff] }
  0x2d   : > { %2281 = vmatprep.mubr.msk.f32.mxu0 %vm258_vm0, %v235_v32 }
  0x30   : > { %2282 = vmatmul.mubr.msk.f32.gmra.mrb[10].mxu0 %vm258_vm0, %v236_v33 }
  0x31   : > { %2284 = vmatprep.mubr.msk.f32.mxu0 %vm258_vm0, %v237_v34  ;;  %v1966_v34 = vld [vmem:[%s3405_s3 + $0x88] sm:$0xff] }
  0x32   : > { %v2606_v42 = vpack.c.bf16 %v1966_v34, %v1965_v31 }
  0x34   : > { %2285 = vmatmul.mubr.msk.f32.gmra.mrb[12].mxu0 %vm258_vm0, %v238_v35  ;;  %v2008_v35 = vld [vmem:[%s3405_s3 + $0x188] sm:$0xff] }
  0x35   : > { %2287 = vmatprep.mubr.msk.f32.mxu0 %vm258_vm0, %v239_v36  ;;  %v2009_v36 = vld [vmem:[%s3405_s3 + $0x190] sm:$0xff] }
  0x36   : > { %v2648_v46 = vpack.c.bf16 %v2009_v36, %v2008_v35  ;;  %v2001_v36 = vld [vmem:[%s3405_s3 + $0x160] sm:$0xff] }
  0x38   : > { %2288 = vmatmul.mubr.msk.f32.gmra.mrb[14].mxu0 %vm258_vm0, %v240_v37 }
  0x39   : > { %2355 = vmatprep.mubr.msk.f32.mxu0 %vm2751_vm5, %v2750_v41 }
  0xef   : > { %v2268_v54 = vpop.f32.mrb[0].mxu0 }
  0xf0   : > { %v383_v57 = vadd.f32 %v2268_v54, %v2921_v53  ;;  %v377_v58 = vpop.f32.mrb[1].mxu0 }
  0xf1   : > { %v378_v16 = vadd.f32 %v2921_v53, %v377_v58  ;;  %v2012_v58 = vld [vmem:[%s3405_s3 + $0x1a8] sm:$0xff] }
  0xf2   : > { %vm457_vm6 = vcmp.gt.f32.partialorder %v383_v57, 0.0  ;;  %v473_v59 = vmul.f32 0.2, %v383_v57 }
  0xf3   : > { %v2271_v63 = vpop.f32.mrb[2].mxu0  ;;  %v472_v26 = vmul.f32 0.2, %v378_v16  ;;  %vm456_vm9 = vcmp.gt.f32.partialorder %v378_v16, 0.0 }
  0xf4   : > { %v489_v2 = vsel %vm457_vm6, %v383_v57, %v473_v59  ;;  %v393_v3 = vadd.f32 %v2271_v63, %v2921_v53  ;;  %v2943_v4 = vpop.f32.mrb[3].mxu0  ;;  %v2013_v59 = vld [vmem:[%s3405_s3 + $0x1b0] sm:$0xff]  ;;  %v1982_v63 = vld [vmem:[%s3405_s3 + $0xe8] sm:$0xff] }
  0xf5   : > { %2305 = vmatmul.mubr.msk.f32.vlgmr.msra.gmra.mrb[0].mxu1 %vm519_vm7, %v489_v2  ;;  %v488_v38 = vsel %vm456_vm9, %v378_v16, %v472_v26  ;;  %v388_v54 = vadd.f32 %v2921_v53, %v2943_v4  ;;  %v2654_v2 = vpack.c.bf16 %v2013_v59, %v2012_v58  ;;  %v2014_v16 = vld [vmem:[%s3405_s3 + $0x1b8] sm:$0x3]  ;;  %v2048_v59 = vld [vmem:[%s3405_s3 + $0x288] sm:$0xff] }
  0xf6   : > { %2595 = vmatpush3.bf16.msra.mxu1 %v2594_v60  ;;  %2321 = vmatprep.mubr.msk.f32.mxu1 %vm2751_vm5, %v2750_v41  ;;  %vm459_vm8 = vcmp.gt.f32.partialorder %v393_v3, 0.0  ;;  %v475_v7 = vmul.f32 0.2, %v393_v3 }
  0xf7   : > { %2596 = vmatprep.subr.bf16.mxu1 %v2748_v8  ;;  %v2274_v13 = vpop.f32.mrb[4].mxu0  ;;  %v474_v1 = vmul.f32 0.2, %v388_v54  ;;  %vm458_vm11 = vcmp.gt.f32.partialorder %v388_v54, 0.0 }
  0xf8   : > { %v491_v14 = vsel %vm459_vm8, %v393_v3, %v475_v7  ;;  %v2961_v15 = vpop.f32.mrb[5].mxu0  ;;  %v403_v22 = vadd.f32 %v2274_v13, %v2921_v53  ;;  %v2621_v7 = vpack.c.bf16 %v1982_v63, %v1981_v62  ;;  %v2027_v13 = vld [vmem:[%s3405_s3 + $0x200] sm:$0xff]  ;;  %v2018_v63 = vld [vmem:[%s3405_s3 + $0x1c8] sm:$0xff] }
  0xf9   : > { %2356 = vmatmul.mubr.msk.f32.vlgmr.msra.gmra.mrb[16].mxu0 %vm519_vm7, %v491_v14  ;;  %v490_v14 = vsel %vm458_vm11, %v388_v54, %v474_v1  ;;  %v2666_v20 = vpack.c.bf16 %v2027_v13, %v2026_v12  ;;  %v398_v25 = vadd.f32 %v2921_v53, %v2961_v15  ;;  %v1999_v15 = vld [vmem:[%s3405_s3 + $0x150] sm:$0xff]  ;;  %v2047_v54 = vld [vmem:[%s3405_s3 + $0x280] sm:$0xff] }
  0xfa   : > { %2598 = vmatpush3.bf16.msra.mxu1 %v2597_v5  ;;  %2631 = vmatpush3.bf16.msra.mxu0 %v2630_v9  ;;  %v477_v32 = vmul.f32 0.2, %v403_v22  ;;  %vm461_vm10 = vcmp.gt.f32.partialorder %v403_v22, 0.0  ;;  %v1969_v5 = vld [vmem:[%s3405_s3 + $0xa0] sm:$0x3]  ;;  %v1983_v9 = vld [vmem:[%s3405_s3 + $0xf0] sm:$0xff] }
  0xfb   : > { %2599 = vmatprep.subr.bf16.mxu1 %v2748_v8  ;;  %2632 = vmatprep.subr.bf16.mxu0 %v2748_v8  ;;  %v2277_v21 = vpop.f32.mrb[6].mxu0  ;;  %vm460_vm13 = vcmp.gt.f32.partialorder %v398_v25, 0.0  ;;  %v2021_v13 = vld [vmem:[%s3405_s3 + $0x1e0] sm:$0xff] }
  0xfc   : > { %2389 = vmatprep.mubr.msk.f32.mxu0 %vm2751_vm5, %v2750_v41  ;;  %v2976_v23 = vpop.f32.mrb[7].mxu0  ;;  %v493_v45 = vsel %vm461_vm10, %v403_v22, %v477_v32  ;;  %v413_v61 = vadd.f32 %v2277_v21, %v2921_v53  ;;  %v1986_v21 = vld [vmem:[%s3405_s3 + $0x108] sm:$0xff]  ;;  %v2000_v32 = vld [vmem:[%s3405_s3 + $0x158] sm:$0xff] }
  0xfd   : > { %v2028_v22 = vld [vmem:[%s3405_s3 + $0x208] sm:$0xff]  ;;  %v2639_v35 = vpack.c.bf16 %v2000_v32, %v1999_v15  ;;  %v2037_v15 = vld [vmem:[%s3405_s3 + $0x240] sm:$0xff] }
  0xfe   : > { %2601 = vmatpush3.bf16.msra.mxu1 %v2600_v17  ;;  %2634 = vmatpush3.bf16.msra.mxu0 %v2633_v18  ;;  %v479_v10 = vmul.f32 0.2, %v413_v61  ;;  %vm463_vm12 = vcmp.gt.f32.partialorder %v413_v61, 0.0  ;;  %v2624_v17 = vpack.c.bf16 %v1984_v11, %v1983_v9  ;;  %v1985_v18 = vld [vmem:[%s3405_s3 + $0x100] sm:$0xff]  ;;  %v2050_v11 = vld [vmem:[%s3405_s3 + $0x298] sm:$0x3] }
  0xff   : > { %2319 = vmatprep.subr.mxu1 %v2750_v41  ;;  %2635 = vmatprep.subr.bf16.mxu0 %v2748_v8  ;;  %v2989_v29 = vpop.f32.mrb[8].mxu0  ;;  %v2627_v26 = vpack.c.bf16 %v1986_v21, %v1985_v18  ;;  %v2063_v9 = vld [vmem:[%s3405_s3 + $0x2e0] sm:$0xff]  ;;  %v2064_v18 = vld [vmem:[%s3405_s3 + $0x2e8] sm:$0xff] }
 0x100   : > { %v417_v33 = vpop.f32.mrb[9].mxu0  ;;  %v495_v19 = vsel %vm463_vm12, %v413_v61, %v479_v10  ;;  %v423_v31 = vadd.f32 %v2989_v29, %v2921_v53  ;;  %v1987_v29 = vld [vmem:[%s3405_s3 + $0x110] sm:$0x3] }
 0x101   : > { %v3004_v37 = vadd.f32 %v2921_v53, %v417_v33  ;;  %v476_v33 = vmul.f32 0.2, %v398_v25  ;;  %v2049_v61 = vld [vmem:[%s3405_s3 + $0x290] sm:$0xff] }
 0x102   : > { %2320 = vmatpush3.msk.msra.mxu1 %vm523_vm4, %v510_v28  ;;  %2637 = vmatpush3.bf16.msra.mxu0 %v2636_v27  ;;  %v2669_v27 = vpack.c.bf16 %v2029_v24, %v2028_v22  ;;  %v2030_v28 = vld [vmem:[%s3405_s3 + $0x218] sm:$0xff]  ;;  %vm465_vm14 = vcmp.gt.f32.partialorder %v423_v31, 0.0  ;;  %v2690_v1 = vpack.c.bf16 %v2049_v61, %v2048_v59  ;;  %v2067_v24 = vld [vmem:[%s3405_s3 + $0x300] sm:$0xff]  ;;  %v2055_v59 = vld [vmem:[%s3405_s3 + $0x2b0] sm:$0xff] }
 0x103   : > { %2322 = vmatmul.mubr.msk.f32.vlgmr.msra.gmra.mrb[2].mxu1 %vm519_vm7, %v488_v38  ;;  %2602 = vmatprep.subr.bf16.mxu1 %v2748_v8  ;;  %v3012_v40 = vpop.f32.mrb[10].mxu0  ;;  %v481_v38 = vmul.f32 0.2, %v423_v31  ;;  %v492_v44 = vsel %vm460_vm13, %v398_v25, %v476_v33  ;;  %v2066_v22 = vld [vmem:[%s3405_s3 + $0x2f8] sm:$0xff]  ;;  %v2035_v25 = vld [vmem:[%s3405_s3 + $0x230] sm:$0xff]  ;;  %vm464_vm1 = vcmp.gt.f32.partialorder %v3004_v37, 0.0 }
 0x104   : > { %2604 = vmatpush3.bf16.msra.mxu1 %v2603_v30  ;;  %2338 = vmatprep.mubr.msk.f32.mxu1 %vm2751_vm5, %v2750_v41  ;;  %v427_v47 = vpop.f32.mrb[11].mxu0  ;;  %v2031_v30 = vld [vmem:[%s3405_s3 + $0x220] sm:$0xff]  ;;  %v433_v62 = vadd.f32 %v3012_v40, %v2921_v53  ;;  %v2038_v33 = vld [vmem:[%s3405_s3 + $0x248] sm:$0xff]  ;;  %v2056_v61 = vld [vmem:[%s3405_s3 + $0x2b8] sm:$0xff] }
 0x105   : > { %2605 = vmatprep.subr.bf16.mxu1 %v2748_v8  ;;  %2387 = vmatprep.subr.mxu0 %v2750_v41  ;;  %v3032_v50 = vadd.f32 %v2921_v53, %v427_v47  ;;  %v2672_v34 = vpack.c.bf16 %v2031_v30, %v2030_v28  ;;  %v2003_v47 = vld [vmem:[%s3405_s3 + $0x170] sm:$0xff]  ;;  %v497_v48 = vsel %vm465_vm14, %v423_v31, %v481_v38 }
 0x106   : > { %2388 = vmatpush3.msk.msra.mxu0 %vm523_vm4, %v1996_v39  ;;  %v2002_v39 = vld [vmem:[%s3405_s3 + $0x168] sm:$0xff]  ;;  %vm467_vm0 = vcmp.gt.f32.partialorder %v433_v62, 0.0  ;;  %v2708_v28 = vpack.c.bf16 %v2067_v24, %v2066_v22  ;;  %v2023_v30 = vld [vmem:[%s3405_s3 + $0x1f0] sm:$0x3]  ;;  %v2678_v38 = vpack.c.bf16 %v2038_v33, %v2037_v15 }
 0x107   : > { %2647 = vmatprep.subr.bf16.mxu0 %v2748_v8  ;;  %2390 = vmatmul.mubr.msk.f32.vlgmr.msra.gmra.mrb[18].mxu0 %vm519_vm7, %v493_v45  ;;  %v2286_v52 = vpop.f32.mrb[12].mxu0  ;;  %v2032_v45 = vld [vmem:[%s3405_s3 + $0x228] sm:$0x3]  ;;  %vm466_vm3 = vcmp.gt.f32.partialorder %v3032_v50, 0.0 }
 0x108   : > { %2607 = vmatpush3.bf16.msra.mxu1 %v2606_v42  ;;  %2649 = vmatpush3.bf16.msra.mxu0 %v2648_v46  ;;  %v3040_v56 = vadd.f32 %v2286_v52, %v2921_v53  ;;  %v437_v57 = vpop.f32.mrb[13].mxu0  ;;  %v2044_v42 = vld [vmem:[%s3405_s3 + $0x268] sm:$0xff]  ;;  %v2642_v46 = vpack.c.bf16 %v2002_v39, %v2001_v36  ;;  %v2046_v52 = vld [vmem:[%s3405_s3 + $0x278] sm:$0xff]  ;;  %v2039_v39 = vld [vmem:[%s3405_s3 + $0x250] sm:$0xff] }
 0x109   : > { %2608 = vmatprep.subr.bf16.mxu1 %v2748_v8  ;;  %2650 = vmatprep.subr.bf16.mxu0 %v2748_v8  ;;  %v3051_v60 = vadd.f32 %v2921_v53, %v437_v57  ;;  %v2684_v49 = vpack.c.bf16 %v2045_v43, %v2044_v42  ;;  %v2687_v58 = vpack.c.bf16 %v2047_v54, %v2046_v52  ;;  %v2068_v36 = vld [vmem:[%s3405_s3 + $0x308] sm:$0x3]  ;;  %v2040_v43 = vld [vmem:[%s3405_s3 + $0x258] sm:$0xff]  ;;  %v482_v52 = vmul.f32 0.2, %v3032_v50 }
 0x10a   : > { %2423 = vmatprep.mubr.msk.f32.mxu0 %vm2751_vm5, %v2750_v41  ;;  %v485_v32 = vmul.f32 0.2, %v3040_v56  ;;  %vm469_vm2 = vcmp.gt.f32.partialorder %v3040_v56, 0.0 }
 0x10b   : > { %v2289_v0 = vpop.f32.mrb[14].mxu0  ;;  %vm468_vm8 = vcmp.gt.f32.partialorder %v3051_v60, 0.0 }
 0x10c   : > { %2610 = vmatpush3.bf16.msra.mxu1 %v2609_v51  ;;  %2652 = vmatpush3.bf16.msra.mxu0 %v2651_v55  ;;  %v3063_v3 = vadd.f32 %v2289_v0, %v2921_v53  ;;  %v447_v4 = vpop.f32.mrb[15].mxu0  ;;  %v2004_v51 = vld [vmem:[%s3405_s3 + $0x178] sm:$0xff]  ;;  %v408_v55 = vadd.f32 %v2921_v53, %v2976_v23  ;;  %v2017_v23 = vld [vmem:[%s3405_s3 + $0x1c0] sm:$0xff] }
 0x10d   : > { %2336 = vmatprep.subr.mxu1 %v2750_v41  ;;  %2653 = vmatprep.subr.bf16.mxu0 %v2748_v8  ;;  %v3071_v6 = vadd.f32 %v2921_v53, %v447_v4  ;;  %v2645_v57 = vpack.c.bf16 %v2004_v51, %v2003_v47  ;;  %v2005_v53 = vld [vmem:[%s3405_s3 + $0x180] sm:$0x3]  ;;  %v2657_v40 = vpack.c.bf16 %v2018_v63, %v2017_v23  ;;  %v483_v4 = vmul.f32 0.2, %v433_v62  ;;  %v2084_v47 = vld [vmem:[%s3405_s3 + $0x368] sm:$0xff] }
 0x10e   : > { %v478_v0 = vmul.f32 0.2, %v408_v55  ;;  %vm462_vm15 = vcmp.gt.f32.partialorder %v408_v55, 0.0  ;;  %v2054_v51 = vld [vmem:[%s3405_s3 + $0x2a8] sm:$0xff]  ;;  %vm471_vm6 = vcmp.gt.f32.partialorder %v3063_v3, 0.0  ;;  %v2696_v63 = vpack.c.bf16 %v2056_v61, %v2055_v59 }
 0x10f   : > { %v2086_v23 = vld [vmem:[%s3405_s3 + $0x378] sm:$0x3]  ;;  %vm470_vm9 = vcmp.gt.f32.partialorder %v3071_v6, 0.0 }
 0x110   : > { %2337 = vmatpush3.msk.msra.mxu1 %vm523_vm4, %v1969_v5  ;;  %2655 = vmatpush3.bf16.msra.mxu0 %v2654_v2  ;;  %v2019_v2 = vld [vmem:[%s3405_s3 + $0x1d0] sm:$0xff]  ;;  %v2020_v5 = vld [vmem:[%s3405_s3 + $0x1d8] sm:$0xff]  ;;  %v494_v10 = vsel %vm462_vm15, %v408_v55, %v478_v0  ;;  %v2041_v55 = vld [vmem:[%s3405_s3 + $0x260] sm:$0x3] }
 0x111   : > { %2339 = vmatmul.mubr.msk.f32.vlgmr.msra.gmra.mrb[4].mxu1 %vm519_vm7, %v490_v14  ;;  %2620 = vmatprep.subr.bf16.mxu1 %v2748_v8  ;;  %v2660_v12 = vpack.c.bf16 %v2020_v5, %v2019_v2  ;;  %v499_v14 = vsel %vm467_vm0, %v433_v62, %v483_v4  ;;  %v498_v62 = vsel %vm466_vm3, %v3032_v50, %v482_v52  ;;  %v2057_v50 = vld [vmem:[%s3405_s3 + $0x2c0] sm:$0xff]  ;;  %v484_v2 = vmul.f32 0.2, %v3051_v60  ;;  %v2059_v4 = vld [vmem:[%s3405_s3 + $0x2d0] sm:$0x3] }
 0x112   : > { %2622 = vmatpush3.bf16.msra.mxu1 %v2621_v7  ;;  %2372 = vmatprep.mubr.msk.f32.mxu1 %vm2751_vm5, %v2750_v41  ;;  %v2062_v7 = vld [vmem:[%s3405_s3 + $0x2d8] sm:$0xff] }
 0x113   : > { %2623 = vmatprep.subr.bf16.mxu1 %v2748_v8  ;;  %2421 = vmatprep.subr.mxu0 %v2750_v41 }
 0x114   : > { %2422 = vmatpush3.msk.msra.mxu0 %vm523_vm4, %v2014_v16  ;;  %v2702_v16 = vpack.c.bf16 %v2063_v9, %v2062_v7  ;;  %v2073_v7 = vld [vmem:[%s3405_s3 + $0x320] sm:$0xff]  ;;  %v2074_v9 = vld [vmem:[%s3405_s3 + $0x328] sm:$0xff] }
 0x115   : > { %2665 = vmatprep.subr.bf16.mxu0 %v2748_v8  ;;  %2424 = vmatmul.mubr.msk.f32.vlgmr.msra.gmra.mrb[20].mxu0 %vm519_vm7, %v495_v19  ;;  %v2065_v19 = vld [vmem:[%s3405_s3 + $0x2f0] sm:$0xff] }
 0x116   : > { %2625 = vmatpush3.bf16.msra.mxu1 %v2624_v17  ;;  %2667 = vmatpush3.bf16.msra.mxu0 %v2666_v20  ;;  %v2022_v17 = vld [vmem:[%s3405_s3 + $0x1e8] sm:$0xff]  ;;  %v2705_v21 = vpack.c.bf16 %v2065_v19, %v2064_v18 }
 0x117   : > { %2626 = vmatprep.subr.bf16.mxu1 %v2748_v8  ;;  %2668 = vmatprep.subr.bf16.mxu0 %v2748_v8  ;;  %v2663_v20 = vpack.c.bf16 %v2022_v17, %v2021_v13 }
 0x118   : > { %2457 = vmatprep.mubr.msk.f32.mxu0 %vm2751_vm5, %v2750_v41 }
 0x11a   : > { %2628 = vmatpush3.bf16.msra.mxu1 %v2627_v26  ;;  %2670 = vmatpush3.bf16.msra.mxu0 %v2669_v27  ;;  %v2036_v26 = vld [vmem:[%s3405_s3 + $0x238] sm:$0xff]  ;;  %v480_v27 = vmul.f32 0.2, %v3004_v37 }
 0x11b   : > { %2370 = vmatprep.subr.mxu1 %v2750_v41  ;;  %2671 = vmatprep.subr.bf16.mxu0 %v2748_v8  ;;  %v2675_v31 = vpack.c.bf16 %v2036_v26, %v2035_v25 }
 0x11e   : > { %2371 = vmatpush3.msk.msra.mxu1 %vm523_vm4, %v1987_v29  ;;  %2673 = vmatpush3.bf16.msra.mxu0 %v2672_v34  ;;  %v2080_v34 = vld [vmem:[%s3405_s3 + $0x348] sm:$0xff]  ;;  %v2081_v29 = vld [vmem:[%s3405_s3 + $0x350] sm:$0xff] }
 0x11f   : > { %2373 = vmatmul.mubr.msk.f32.vlgmr.msra.gmra.mrb[6].mxu1 %vm519_vm7, %v492_v44  ;;  %2638 = vmatprep.subr.bf16.mxu1 %v2748_v8  ;;  %v2720_v42 = vpack.c.bf16 %v2081_v29, %v2080_v34  ;;  %v2082_v44 = vld [vmem:[%s3405_s3 + $0x358] sm:$0xff] }
 0x120   : > { %2640 = vmatpush3.bf16.msra.mxu1 %v2639_v35  ;;  %2406 = vmatprep.mubr.msk.f32.mxu1 %vm2751_vm5, %v2750_v41  ;;  %v496_v35 = vsel %vm464_vm1, %v3004_v37, %v480_v27  ;;  %v501_v37 = vsel %vm469_vm2, %v3040_v56, %v485_v32  ;;  %v2681_v56 = vpack.c.bf16 %v2040_v43, %v2039_v39 }
 0x121   : > { %2641 = vmatprep.subr.bf16.mxu1 %v2748_v8  ;;  %2455 = vmatprep.subr.mxu0 %v2750_v41 }
 0x122   : > { %2456 = vmatpush3.msk.msra.mxu0 %vm523_vm4, %v2032_v45  ;;  %v2083_v45 = vld [vmem:[%s3405_s3 + $0x360] sm:$0xff] }
 0x123   : > { %2683 = vmatprep.subr.bf16.mxu0 %v2748_v8  ;;  %2458 = vmatmul.mubr.msk.f32.vlgmr.msra.gmra.mrb[22].mxu0 %vm519_vm7, %v497_v48  ;;  %v2085_v48 = vld [vmem:[%s3405_s3 + $0x370] sm:$0xff] }
 0x124   : > { %2643 = vmatpush3.bf16.msra.mxu1 %v2642_v46  ;;  %2685 = vmatpush3.bf16.msra.mxu0 %v2684_v49  ;;  %v2723_v46 = vpack.c.bf16 %v2083_v45, %v2082_v44  ;;  %v2053_v49 = vld [vmem:[%s3405_s3 + $0x2a0] sm:$0xff]  ;;  %v2726_v54 = vpack.c.bf16 %v2085_v48, %v2084_v47 }
 0x125   : > { %2644 = vmatprep.subr.bf16.mxu1 %v2748_v8  ;;  %2686 = vmatprep.subr.bf16.mxu0 %v2748_v8 }
 0x126   : > { %2491 = vmatprep.mubr.msk.f32.mxu0 %vm2751_vm5, %v2750_v41 }
 0x128   : > { %2646 = vmatpush3.bf16.msra.mxu1 %v2645_v57  ;;  %2688 = vmatpush3.bf16.msra.mxu0 %v2687_v58  ;;  %v2693_v57 = vpack.c.bf16 %v2054_v51, %v2053_v49  ;;  %v487_v58 = vmul.f32 0.2, %v3063_v3 }
 0x129   : > { %2404 = vmatprep.subr.mxu1 %v2750_v41  ;;  %2689 = vmatprep.subr.bf16.mxu0 %v2748_v8 }
 0x12a   : > { %v503_v0 = vsel %vm471_vm6, %v3063_v3, %v487_v58  ;;  %v2071_v3 = vld [vmem:[%s3405_s3 + $0x310] sm:$0xff] }
 0x12c   : > { %2405 = vmatpush3.msk.msra.mxu1 %vm523_vm4, %v2005_v53  ;;  %2691 = vmatpush3.bf16.msra.mxu0 %v2690_v1  ;;  %v2058_v1 = vld [vmem:[%s3405_s3 + $0x2c8] sm:$0xff] }
 0x12d   : > { %2407 = vmatmul.mubr.msk.f32.vlgmr.msra.gmra.mrb[8].mxu1 %vm519_vm7, %v494_v10  ;;  %2656 = vmatprep.subr.bf16.mxu1 %v2748_v8  ;;  %v2699_v53 = vpack.c.bf16 %v2058_v1, %v2057_v50  ;;  %v500_v10 = vsel %vm468_vm8, %v3051_v60, %v484_v2  ;;  %v2076_v60 = vld [vmem:[%s3405_s3 + $0x338] sm:$0xff]  ;;  %v2089_v50 = vld [vmem:[%s3406_s4] ss:$0 sm:$0xff] }
 0x12e   : > { %2658 = vmatpush3.bf16.msra.mxu1 %v2657_v40  ;;  %2440 = vmatprep.mubr.msk.f32.mxu1 %vm2751_vm5, %v2750_v41  ;;  %v2072_v40 = vld [vmem:[%s3405_s3 + $0x318] sm:$0xff] }
 0x12f   : > { %2659 = vmatprep.subr.bf16.mxu1 %v2748_v8  ;;  %2489 = vmatprep.subr.mxu0 %v2750_v41  ;;  %v2711_v5 = vpack.c.bf16 %v2072_v40, %v2071_v3 }
 0x130   : > { %2490 = vmatpush3.msk.msra.mxu0 %vm523_vm4, %v2050_v11  ;;  %v2714_v11 = vpack.c.bf16 %v2074_v9, %v2073_v7 }
 0x131   : > { %2701 = vmatprep.subr.bf16.mxu0 %v2748_v8  ;;  %2492 = vmatmul.mubr.msk.f32.vlgmr.msra.gmra.mrb[24].mxu0 %vm519_vm7, %v499_v14  ;;  %v486_v14 = vmul.f32 0.2, %v3071_v6 }
 0x132   : > { %2661 = vmatpush3.bf16.msra.mxu1 %v2660_v12  ;;  %2703 = vmatpush3.bf16.msra.mxu0 %v2702_v16  ;;  %v2075_v12 = vld [vmem:[%s3405_s3 + $0x330] sm:$0xff]  ;;  %v2077_v16 = vld [vmem:[%s3405_s3 + $0x340] sm:$0x3] }
 0x133   : > { %2662 = vmatprep.subr.bf16.mxu1 %v2748_v8  ;;  %2704 = vmatprep.subr.bf16.mxu0 %v2748_v8  ;;  %v2717_v13 = vpack.c.bf16 %v2076_v60, %v2075_v12  ;;  %v502_v17 = vsel %vm470_vm9, %v3071_v6, %v486_v14 }
 0x134   : > { %2525 = vmatprep.mubr.msk.f32.mxu0 %vm2751_vm5, %v2750_v41 }
 0x136   : > { %2664 = vmatpush3.bf16.msra.mxu1 %v2663_v20  ;;  %2706 = vmatpush3.bf16.msra.mxu0 %v2705_v21 }
 0x137   : > { %2438 = vmatprep.subr.mxu1 %v2750_v41  ;;  %2707 = vmatprep.subr.bf16.mxu0 %v2748_v8 }
 0x13a   : > { %2439 = vmatpush3.msk.msra.mxu1 %vm523_vm4, %v2023_v30  ;;  %2709 = vmatpush3.bf16.msra.mxu0 %v2708_v28 }
 0x13b   : > { %2441 = vmatmul.mubr.msk.f32.vlgmr.msra.gmra.mrb[10].mxu1 %vm519_vm7, %v496_v35  ;;  %2674 = vmatprep.subr.bf16.mxu1 %v2748_v8 }
 0x13c   : > { %2676 = vmatpush3.bf16.msra.mxu1 %v2675_v31  ;;  %2474 = vmatprep.mubr.msk.f32.mxu1 %vm2751_vm5, %v2750_v41 }
 0x13d   : > { %2677 = vmatprep.subr.bf16.mxu1 %v2748_v8  ;;  %2523 = vmatprep.subr.mxu0 %v2750_v41 }
 0x13e   : > { %2524 = vmatpush3.msk.msra.mxu0 %vm523_vm4, %v2068_v36 }
 0x13f   : > { %2719 = vmatprep.subr.bf16.mxu0 %v2748_v8  ;;  %2526 = vmatmul.mubr.msk.f32.vlgmr.msra.gmra.mrb[26].mxu0 %vm519_vm7, %v501_v37 }
 0x140   : > { %2679 = vmatpush3.bf16.msra.mxu1 %v2678_v38  ;;  %2721 = vmatpush3.bf16.msra.mxu0 %v2720_v42 }
 0x141   : > { %2680 = vmatprep.subr.bf16.mxu1 %v2748_v8  ;;  %2722 = vmatprep.subr.bf16.mxu0 %v2748_v8 }
 0x142   : > { %2559 = vmatprep.mubr.msk.f32.mxu0 %vm2751_vm5, %v2750_v41 }
 0x144   : > { %2682 = vmatpush3.bf16.msra.mxu1 %v2681_v56  ;;  %2724 = vmatpush3.bf16.msra.mxu0 %v2723_v46 }
 0x145   : > { %2472 = vmatprep.subr.mxu1 %v2750_v41  ;;  %2725 = vmatprep.subr.bf16.mxu0 %v2748_v8 }
 0x148   : > { %2473 = vmatpush3.msk.msra.mxu1 %vm523_vm4, %v2041_v55  ;;  %2727 = vmatpush3.bf16.msra.mxu0 %v2726_v54 }
 0x149   : > { %2475 = vmatmul.mubr.msk.f32.vlgmr.msra.gmra.mrb[12].mxu1 %vm519_vm7, %v498_v62  ;;  %2692 = vmatprep.subr.bf16.mxu1 %v2748_v8 }
 0x14a   : > { %2694 = vmatpush3.bf16.msra.mxu1 %v2693_v57  ;;  %2508 = vmatprep.mubr.msk.f32.mxu1 %vm2751_vm5, %v2750_v41 }
 0x14b   : > { %2695 = vmatprep.subr.bf16.mxu1 %v2748_v8  ;;  %2557 = vmatprep.subr.mxu0 %v2750_v41 }
 0x14c   : > { %2558 = vmatpush3.msk.msra.mxu0 %vm523_vm4, %v2086_v23 }
 0x14d   : > { %2560 = vmatmul.mubr.msk.f32.vlgmr.msra.gmra.mrb[28].mxu0 %vm519_vm7, %v503_v0 }
 0x14e   : > { %2697 = vmatpush3.bf16.msra.mxu1 %v2696_v63 }
 0x14f   : > { %2698 = vmatprep.subr.bf16.mxu1 %v2748_v8 }
 0x152   : > { %2700 = vmatpush3.bf16.msra.mxu1 %v2699_v53 }
 0x153   : > { %2506 = vmatprep.subr.mxu1 %v2750_v41 }
 0x156   : > { %2507 = vmatpush3.msk.msra.mxu1 %vm523_vm4, %v2059_v4 }
 0x157   : > { %2509 = vmatmul.mubr.msk.f32.vlgmr.msra.gmra.mrb[14].mxu1 %vm519_vm7, %v500_v10  ;;  %2710 = vmatprep.subr.bf16.mxu1 %v2748_v8 }
 0x158   : > { %2712 = vmatpush3.bf16.msra.mxu1 %v2711_v5  ;;  %2542 = vmatprep.mubr.msk.f32.mxu1 %vm2751_vm5, %v2750_v41 }
 0x159   : > { %2713 = vmatprep.subr.bf16.mxu1 %v2748_v8 }
 0x15c   : > { %2715 = vmatpush3.bf16.msra.mxu1 %v2714_v11 }
 0x15d   : > { %2716 = vmatprep.subr.bf16.mxu1 %v2748_v8 }
 0x160   : > { %2718 = vmatpush3.bf16.msra.mxu1 %v2717_v13 }
 0x161   : > { %2540 = vmatprep.subr.mxu1 %v2750_v41 }
 0x164   : > { %2541 = vmatpush3.msk.msra.mxu1 %vm523_vm4, %v2077_v16  ;;  %vm1871_vm4 = vcmask 326656  }
 0x165   : > { %2543 = vmatmul.mubr.msk.f32.vlgmr.msra.gmra.mrb[16].mxu1 %vm519_vm7, %v502_v17 }
 0x1c8   : > { %v593_v18 = vpop.f32.mrb[0].mxu1 }
 0x1c9   : > { %v2306_v19 = vpop.f32.mrb[1].mxu1 }
 0x1cc   : > { %v838_v8 = vpop.f32.mrb[16].mxu0 }
 0x1cd   : > { %v2357_v20 = vpop.f32.mrb[17].mxu0 }
 0x1d6   : > { %v669_v21 = vpop.f32.mrb[2].mxu1 }
 0x1d7   : > { %v670_v22 = vadd.f32 %v669_v21, %v593_v18  ;;  %v2323_v24 = vpop.f32.mrb[3].mxu1 }
 0x1da   : > { %v1008_v25 = vpop.f32.mrb[18].mxu0 }
 0x1db   : > { %v2391_v26 = vpop.f32.mrb[19].mxu0 }
 0x1e4   : > { %v753_v41 = vpop.f32.mrb[4].mxu1 }
 0x1e5   : > { %v757_v27 = vadd.f32 %v753_v41, %v670_v22  ;;  %v2340_v28 = vpop.f32.mrb[5].mxu1 }
 0x1e7   : > { %v842_v30 = vadd.f32 %v838_v8, %v757_v27 }
 0x1e8   : > { %v1178_v31 = vpop.f32.mrb[20].mxu0 }
 0x1e9   : > { %v2425_v15 = vpop.f32.mrb[21].mxu0 }
 0x1f2   : > { %v923_v6 = vpop.f32.mrb[6].mxu1 }
 0x1f3   : > { %v927_v32 = vadd.f32 %v923_v6, %v842_v30  ;;  %v2374_v33 = vpop.f32.mrb[7].mxu1 }
 0x1f5   : > { %v1012_v34 = vadd.f32 %v1008_v25, %v927_v32 }
 0x1f6   : > { %v1348_v29 = vpop.f32.mrb[22].mxu0 }
 0x1f7   : > { %v2459_v35 = vpop.f32.mrb[23].mxu0 }
 0x200   : > { %v1093_v36 = vpop.f32.mrb[8].mxu1 }
 0x201   : > { %v1097_v38 = vadd.f32 %v1093_v36, %v1012_v34  ;;  %v2408_v39 = vpop.f32.mrb[9].mxu1 }
 0x203   : > { %v1182_v37 = vadd.f32 %v1178_v31, %v1097_v38 }
 0x204   : > { %v1518_v42 = vpop.f32.mrb[24].mxu0 }
 0x205   : > { %v2493_v43 = vpop.f32.mrb[25].mxu0 }
 0x20e   : > { %v1263_v44 = vpop.f32.mrb[10].mxu1 }
 0x20f   : > { %v1267_v45 = vadd.f32 %v1263_v44, %v1182_v37  ;;  %v2442_v56 = vpop.f32.mrb[11].mxu1 }
 0x211   : > { %v1352_v46 = vadd.f32 %v1348_v29, %v1267_v45 }
 0x212   : > { %v1688_v47 = vpop.f32.mrb[26].mxu0 }
 0x213   : > { %v2527_v48 = vpop.f32.mrb[27].mxu0 }
 0x21c   : > { %v1433_v49 = vpop.f32.mrb[12].mxu1 }
 0x21d   : > { %v1437_v51 = vadd.f32 %v1433_v49, %v1352_v46  ;;  %v2476_v52 = vpop.f32.mrb[13].mxu1 }
 0x21f   : > { %v1522_v54 = vadd.f32 %v1518_v42, %v1437_v51 }
 0x220   : > { %v1858_v55 = vpop.f32.mrb[28].mxu0 }
 0x221   : > { %v2561_v57 = vpop.f32.mrb[29].mxu0 }
 0x22a   : > { %v1603_v58 = vpop.f32.mrb[14].mxu1 }
 0x22b   : > { %v1607_v59 = vadd.f32 %v1603_v58, %v1522_v54  ;;  %v2510_v61 = vpop.f32.mrb[15].mxu1 }
 0x22d   : > { %v1692_v62 = vadd.f32 %v1688_v47, %v1607_v59 }
 0x238   : > { %v1773_v23 = vpop.f32.mrb[16].mxu1 }
 0x239   : > { %v1777_v63 = vadd.f32 %v1773_v23, %v1692_v62  ;;  %v2544_v0 = vpop.f32.mrb[17].mxu1 }
 0x23b   : > { %v1862_v1 = vadd.f32 %v1858_v55, %v1777_v63 }
 0x23d   : > { %v1870_v53 = vadd.f32 %v2089_v50, %v1862_v1 }
 0x23f   : > { %1872 = vst.msk [vmem:[%s224_s23] sm:$0xff] %vm1871_vm4, %v1870_v53 }
 0x240 PF: > { %s15_s18 = sadd.s32 1, %s2746_s18  }
 0x241   : > { %p12_p5 = scmp.ge.s32.totalorder %s15_s18, 4  }
 0x243   :  { %14 = sbr.rel (!%p12_p5) target bundleno = 1 (0x1), region = 85 }

</bundles_post_ra>
